<compile_context>
chip_gen: v5e
topology: v5e:2x2
jax: 0.10.0
libtpu: 0.0.40
codegen_flags: <defaults>
</compile_context>

<pallas_src>
import numpy as np
import jax
import jax.numpy as jnp
from jax.experimental import pallas as pl
from jax.experimental.pallas import tpu as pltpu

PHI = (1.0 + np.sqrt(5.0)) / 2.0

# Small, forward-consistent hyperparameters.
NUM_MODULES = 4
DIM = 32
NUM_AGENTS = 3
MODALITIES = 3
BATCH = 16
PHI_SPLIT = int(np.floor(NUM_MODULES / PHI))  # == 2 (dead in reference: gate has 1 column)

_W = NUM_MODULES * DIM            # 128  (concatenated module width)
KIN = DIM * MODALITIES            # 96   (flattened [dim, modalities] input width)
PACK_ROWS = KIN + 8               # 104  (96 weights + bias row, padded to a sublane tile)


def neuro_kernel(xT_ref, p_ref, out_ref):
    """xT_ref: [96, TB] f32 (batch on lanes), p_ref: [104, 1] f32, out_ref: [1, TB] f32.

    Entire network folded to one affine map (see fold_params):
        out[b] = sum_k w_full[k] * x_flat[b, k] + b_full
    Pure VPU multiply + cross-sublane reduce, lane-dense [1, TB] store.
    """
    w = p_ref[0:KIN, :]              # [96, 1]  folded weights (column, lane-broadcast)
    b = p_ref[KIN:KIN + 1, :]        # [1, 1]   folded bias
    out_ref[...] = jnp.sum(xT_ref[...] * w, axis=0, keepdims=True) + b   # [1, TB]


def init_params(key):
    """Deterministic params with PyTorch nn.Linear shapes from __init__."""
    ks = jax.random.split(key, 8)

    def lin(k, out_f, in_f):
        bound = 1.0 / np.sqrt(in_f)
        kw, kb = jax.random.split(k)
        w = jax.random.uniform(kw, (out_f, in_f), jnp.float32, -bound, bound)
        b = jax.random.uniform(kb, (1, out_f), jnp.float32, -bound, bound)
        return w, b

    wf, bf = lin(ks[0], DIM, MODALITIES)                      # fractal_map
    wm_list, bm_list = [], []
    for i in range(NUM_MODULES):                              # modules[i]
        w, b = lin(ks[1 + i], DIM, DIM)
        wm_list.append(w)
        bm_list.append(b[0])
    wm = jnp.stack(wm_list)                                   # [NM, DIM, DIM]
    bm = jnp.stack(bm_list)                                   # [NM, DIM]
    wg, bg = lin(ks[5], 1, DIM * NUM_MODULES * MODALITIES)    # gate.logic_rule
    wa, ba = lin(ks[6], NUM_AGENTS, DIM)                      # agent_reflect (reference only)
    return wf, bf, wm, bm, wg, bg, wa, ba


def fold_params(params):
    """Constant-fold the entire forward into a single 96 -> 1 affine map.

    gate(x_flat) = ((x_flat @ w_tilde.T + bf) @ WcatT + bcat) @ wg_f.T + bg
    out          = gate(x_flat) * (1 + (phi-1)/num_agents)   # softmax branch is constant
    =>  out = x_flat @ w_full + b_full
    Folds are done once, in f32 with HIGHEST precision (free — outside the kernel).
    """
    wf, bf, wm, bm, wg, bg, _wa, _ba = params
    hp = jax.lax.Precision.HIGHEST
    # refl_mean is mathematically 1/NUM_AGENTS (softmax rows sum to 1).
    out_scale = 1.0 + (PHI - 1.0) / float(NUM_AGENTS)

    wcatT = jnp.concatenate([wm[i].T for i in range(NUM_MODULES)], axis=1)     # [DIM, 128]
    bcat = bm.reshape(1, _W)                                                   # [1, 128]
    # Fold the [concat]*MODALITIES tiling: sum the 3 modality blocks of wg.
    wg_f = wg.reshape(1, MODALITIES, _W).sum(axis=1)                           # [1, 128]
    # Fold mean over dim into fractal_map: x_flat[b, d*MOD+m] picks wf[:, m]/DIM.
    w_tilde = jnp.tile(wf / float(DIM), (1, DIM))                              # [DIM, 96]

    g = jnp.dot(wcatT, wg_f.T, precision=hp)                                   # [DIM, 1]
    w_full = jnp.dot(w_tilde.T, g, precision=hp) * out_scale                   # [96, 1]
    b_full = (jnp.dot(bf, g, precision=hp)
              + jnp.dot(bcat, wg_f.T, precision=hp) + bg) * out_scale          # [1, 1]

    pack = jnp.zeros((PACK_ROWS, 1), jnp.float32)
    pack = pack.at[0:KIN, :].set(w_full.astype(jnp.float32))
    pack = pack.at[KIN:KIN + 1, :].set(b_full.astype(jnp.float32))
    return pack                                                                # [104, 1]


def neuro_forward(x_multi, pack, batch_tile=512):
    b = x_multi.shape[0]
    # Batch on the lane axis -> lane-dense loads and a lane-dense [1, B] output store.
    xT = x_multi.reshape(b, KIN).T                             # [96, B]
    if b <= batch_tile:
        tb, bp = b, b                                          # single grid step
    else:
        tb = batch_tile                                        # multiple of 128 (unmasked vst)
        bp = ((b + tb - 1) // tb) * tb                         # explicit pad to the tile
        xT = jnp.pad(xT, ((0, 0), (0, bp - b)))
    out = pl.pallas_call(
        neuro_kernel,
        out_shape=jax.ShapeDtypeStruct((1, bp), jnp.float32),
        grid_spec=pltpu.PrefetchScalarGridSpec(
            num_scalar_prefetch=0,
            grid=(bp // tb,),
            in_specs=[
                pl.BlockSpec((KIN, tb), lambda i: (0, i)),
                # Constant index_map -> the 0.4 KB param pack stays VMEM-resident.
                # TODO(synk): pipeline_mode=pl.Buffered(1) would drop the unused second
                # param buffer; left at the default for maximally portable lowering.
                pl.BlockSpec((PACK_ROWS, 1), lambda i: (0, 0)),
            ],
            out_specs=pl.BlockSpec((1, tb), lambda i: (0, i)),
        ),
        # "parallel" batch grid: sharded across v7x's 2 TensorCores when grid > 1.
        compiler_params=pltpu.CompilerParams(dimension_semantics=("parallel",)),
    )(xT, pack)
    return out[0, :b]                                          # [B], like the reference


def neuro_reference(x_multi, params):
    """Pure-JAX literal mirror (unfolded) of the interpreted reference forward."""
    wf, bf, wm, bm, wg, bg, wa, ba = params
    hp = jax.lax.Precision.HIGHEST
    dot = lambda a, w: jax.lax.dot_general(a, w, (((1,), (1,)), ((), ())), precision=hp)
    pooled = jnp.mean(x_multi, axis=1)                         # [B, MODALITIES]
    x = dot(pooled, wf) + bf                                   # fractal_map
    outs = [dot(x, wm[i]) + bm[i] for i in range(NUM_MODULES)]
    concat = jnp.concatenate(outs, axis=1)
    # TODO(synk): SymbolicGate's Linear expects dim*num_modules*modalities features;
    # tile the concat over the modality factor to satisfy the declared shape.
    gate_in = jnp.concatenate([concat] * MODALITIES, axis=1)
    gate_scores = dot(gate_in, wg) + bg
    # TODO(synk): reference applies Linear(dim, num_agents) to concat.mean(dim=1)
    # (a [B] vector — shape bug); average over the module axis instead.
    refl_in = sum(outs) / float(NUM_MODULES)
    reflections = jax.nn.softmax(dot(refl_in, wa) + ba, axis=1)
    refl_mean = jnp.mean(reflections)
    # TODO(synk): gate has one column, so the phi split leaves "right" empty in the
    # reference; use the single gate score for both halves.
    left = jnp.mean(gate_scores[:, :1], axis=1)
    right = jnp.mean(gate_scores[:, :1], axis=1)
    return left + (PHI - 1.0) * right * refl_mean


if __name__ == "__main__":
    key = jax.random.PRNGKey(0)
    k_params, k_x = jax.random.split(key)
    params = init_params(k_params)
    # layout: [batch, dim, modalities]
    x_multi = jax.random.normal(k_x, (BATCH, DIM, MODALITIES), dtype=jnp.float32)

    pack = fold_params(params)
    out = jax.block_until_ready(neuro_forward(x_multi, pack))

    ref = jax.block_until_ready(neuro_reference(x_multi, params))
    np.testing.assert_allclose(np.asarray(out), np.asarray(ref), rtol=1e-4, atol=1e-5)

    print("KERNEL_OK")
</pallas_src>

<mosaic_0001>
module attributes {stable_mosaic.version = 11 : i64} {
  func.func @neuro_kernel(%arg0: i32, %arg1: memref<96x16xf32, #tpu.memory_space<vmem>>, %arg2: memref<104x1xf32, #tpu.memory_space<vmem>>, %arg3: memref<1x16xf32, #tpu.memory_space<vmem>>) attributes {dimension_semantics = [#tpu.dimension_semantics<parallel>], iteration_bounds = array<i64: 1>, scalar_prefetch = 0 : i64, scratch_operands = 0 : i64, tpu.core_type = #tpu.core_type<tc>, window_params = [{transform_indices = @transform_0, window_bounds = array<i64: 96, 16>}, {pipeline_mode = #tpu.pipeline_mode<synchronous>, transform_indices = @transform_1, window_bounds = array<i64: 104, 1>}, {transform_indices = @transform_2, window_bounds = array<i64: 1, 16>}]} {
    %c0 = arith.constant 0 : index
    %c0_0 = arith.constant 0 : index
    %0 = vector.load %arg2[%c0, %c0_0] : memref<104x1xf32, #tpu.memory_space<vmem>>, vector<96x1xf32>
    %c96 = arith.constant 96 : index
    %c0_1 = arith.constant 0 : index
    %1 = vector.load %arg2[%c96, %c0_1] : memref<104x1xf32, #tpu.memory_space<vmem>>, vector<1x1xf32>
    %c0_2 = arith.constant 0 : index
    %c0_3 = arith.constant 0 : index
    %2 = vector.load %arg1[%c0_2, %c0_3] : memref<96x16xf32, #tpu.memory_space<vmem>>, vector<96x16xf32>
    %3 = vector.broadcast %0 : vector<96x1xf32> to vector<96x16xf32>
    %4 = arith.mulf %2, %3 : vector<96x16xf32>
    %cst = arith.constant dense<0.000000e+00> : vector<16xf32>
    %5 = vector.multi_reduction <add>, %4, %cst [0] : vector<96x16xf32> to vector<16xf32>
    %6 = vector.shape_cast %5 : vector<16xf32> to vector<1x16xf32>
    %7 = vector.broadcast %1 : vector<1x1xf32> to vector<1x16xf32>
    %8 = arith.addf %6, %7 : vector<1x16xf32>
    %c0_4 = arith.constant 0 : index
    %c0_5 = arith.constant 0 : index
    %9 = vector.load %arg3[%c0_4, %c0_5] : memref<1x16xf32, #tpu.memory_space<vmem>>, vector<1x16xf32>
    tpu.vector_store %arg3[%c0_4, %c0_5], %8 {strides = array<i32>} : memref<1x16xf32, #tpu.memory_space<vmem>>, vector<1x16xf32>,
    return
  }
  func.func @transform_0(%arg0: i32) -> (i32, i32) {
    %c0_i32 = arith.constant 0 : i32
    %c0_i32_0 = arith.constant 0 : i32
    return %c0_i32, %arg0 : i32, i32
  }
  func.func @transform_1(%arg0: i32) -> (i32, i32) {
    %c0_i32 = arith.constant 0 : i32
    %c0_i32_0 = arith.constant 0 : i32
    %c0_i32_1 = arith.constant 0 : i32
    return %c0_i32, %c0_i32_0 : i32, i32
  }
  func.func @transform_2(%arg0: i32) -> (i32, i32) {
    %c0_i32 = arith.constant 0 : i32
    %c0_i32_0 = arith.constant 0 : i32
    return %c0_i32, %arg0 : i32, i32
  }
}

</mosaic_0001>

<bundles_post_ra>
// kernel: tpu_custom_call.1
= control target key start
LH: loop header
LB: loop body
LE: loop exit
PB: predicated region body
PF: predicated region fallthrough
CT: control target
= control target key end

     0   :  { %v194_v2 = vmov 0   ;;  %s301_s0 = inlined_call_operand.vmem [shape: f32[96,16], index: 0, kind: input, shape index: {}]   ;;  %s302_s1 = inlined_call_operand.vmem [shape: f32[104,1], index: 1, kind: input, shape index: {}]   ;;  %s303_s2 = inlined_call_operand.hbm [shape: f32[1,16], index: 2, kind: output, shape index: {}]  }
   0x1   :  { %v14_v0 = vld [vmem:[%s302_s1 + $0x10] sm:$0xff]  ;;  %v12_v1 = vld [vmem:[%s302_s1] sm:$0xff]  ;;  %166 = vset.pattern.permute.xlu1 %v194_v2  ;;  %165 = vset.pattern.permute.xlu0 %v194_v2 }
   0x2   :  { %v16_v3 = vld [vmem:[%s302_s1 + $0x20] sm:$0xff]  ;;  %49 = vperm.xlu1 %166, %v14_v0   ;;  %39 = vperm.xlu0 %165, %v12_v1  }
   0x3   :  { %167 = vset.pattern.permute.xlu2 %v194_v2 }
   0x4   :  { %59 = vperm.xlu2 %167, %v16_v3  }
   0x5   :  { %7 = vsyncpa [#allocation3], 0  ;;  %v15_v4 = vld [vmem:[%s302_s1 + $0x18] sm:$0xff]  ;;  %v13_v5 = vld [vmem:[%s302_s1 + $0x8] sm:$0xff]  ;;  %vm109_vm0 = vcmask 130048   ;;  %s154_s5 = sshll.u32 %s303_s2, 4  ;;  %s155_s5 = int_to_ptr.hbm [resolvable:$true] %s154_s5 }
   0x6   :  { %v17_v6 = vld [vmem:[%s302_s1 + $0x28] sm:$0xff]  ;;  %v19_v7 = vld [vmem:[%s302_s1 + $0x38] sm:$0xff]  ;;  %v18_v8 = vld [vmem:[%s302_s1 + $0x30] sm:$0xff]  ;;  %vm145_vm1 = vcmask 122880  }
   0x7   :  { %v20_v9 = vld [vmem:[%s302_s1 + $0x40] sm:$0xff]  ;;  %v22_v10 = vld [vmem:[%s302_s1 + $0x50] sm:$0xff]  ;;  %v21_v11 = vld [vmem:[%s302_s1 + $0x48] sm:$0xff] }
   0x8   :  { %v23_v12 = vld [vmem:[%s302_s1 + $0x58] sm:$0xff]  ;;  %v24_v13 = vld [vmem:[%s302_s1 + $0x60] sm:$0x1]  ;;  %v27_v19 = vld [vmem:[%s301_s0 + $0x10] sm:$0xff] }
   0x9   :  { %v25_v18 = vld [vmem:[%s301_s0] sm:$0xff]  ;;  %v26_v20 = vld [vmem:[%s301_s0 + $0x8] sm:$0xff]  ;;  %v28_v22 = vld [vmem:[%s301_s0 + $0x18] sm:$0xff] }
   0xa   :  { %54 = vperm.xlu1 %166, %v15_v4   ;;  %44 = vperm.xlu0 %165, %v13_v5   ;;  %v29_v27 = vld [vmem:[%s301_s0 + $0x20] sm:$0xff]  ;;  %v30_v31 = vld [vmem:[%s301_s0 + $0x28] sm:$0xff]  ;;  %v31_v37 = vld [vmem:[%s301_s0 + $0x30] sm:$0xff] }
   0xb   :  { %v32_v41 = vld [vmem:[%s301_s0 + $0x38] sm:$0xff]  ;;  %v33_v46 = vld [vmem:[%s301_s0 + $0x40] sm:$0xff]  ;;  %v35_v54 = vld [vmem:[%s301_s0 + $0x50] sm:$0xff] }
   0xc   :  { %64 = vperm.xlu2 %167, %v17_v6   ;;  %v34_v55 = vld [vmem:[%s301_s0 + $0x48] sm:$0xff]  ;;  %v36_v58 = vld [vmem:[%s301_s0 + $0x58] sm:$0xff]  ;;  %s195_s0 = smov [#allocation2]  }
   0xd   :  { %s152_s30 = sshll.u32 %s195_s0, 4  ;;  %s153_s30 = int_to_ptr.vmem [resolvable:$true] %s152_s30 }
  0x12   :  { %74 = vperm.xlu1 %166, %v19_v7   ;;  %69 = vperm.xlu0 %165, %v18_v8  }
  0x14   :  { %79 = vperm.xlu2 %167, %v20_v9  }
  0x1a   :  { %89 = vperm.xlu1 %166, %v22_v10   ;;  %84 = vperm.xlu0 %165, %v21_v11  }
  0x1c   :  { %94 = vperm.xlu2 %167, %v23_v12  }
  0x22   :  { %141 = vperm.xlu0 %165, %v24_v13  }
  0x5e   :  { %v60_v14 = vpop.permute.xlu2 %59 }
  0x5f   :  { %v101_v33 = vmul.f32 %v60_v14, %v29_v27 }
  0x61   :  { %v117_v44 = vsel %vm109_vm0, %v101_v33, 0.0 }
  0x66   :  { %v65_v17 = vpop.permute.xlu2 %64 }
  0x67   :  { %v102_v38 = vmul.f32 %v65_v17, %v30_v31 }
  0x69   :  { %v119_v48 = vsel %vm109_vm0, %v102_v38, 0.0 }
  0x6e   :  { %v80_v34 = vpop.permute.xlu2 %79 }
  0x6f   :  { %v105_v51 = vmul.f32 %v80_v34, %v33_v46 }
  0x71   :  { %v125_v62 = vsel %vm109_vm0, %v105_v51, 0.0 }
  0x74   :  { %v50_v15 = vpop.permute.xlu1 %49  ;;  %v40_v16 = vpop.permute.xlu0 %39 }
  0x75   :  { %v97_v21 = vmul.f32 %v40_v16, %v25_v18  ;;  %v99_v25 = vmul.f32 %v50_v15, %v27_v19 }
  0x76   :  { %v95_v56 = vpop.permute.xlu2 %94 }
  0x77   :  { %v110_v28 = vsel %vm109_vm0, %v97_v21, 0.0  ;;  %v113_v35 = vsel %vm109_vm0, %v99_v25, 0.0  ;;  %v108_v2 = vmul.f32 %v95_v56, %v36_v58 }
  0x79   :  { %v131_v7 = vsel %vm109_vm0, %v108_v2, 0.0 }
  0x7c   :  { %v55_v23 = vpop.permute.xlu1 %54  ;;  %v45_v24 = vpop.permute.xlu0 %44 }
  0x7d   :  { %v98_v26 = vmul.f32 %v45_v24, %v26_v20  ;;  %v100_v29 = vmul.f32 %v55_v23, %v28_v22 }
  0x7f   :  { %v111_v30 = vsel %vm109_vm0, %v98_v26, 0.0  ;;  %v115_v39 = vsel %vm109_vm0, %v100_v29, 0.0 }
  0x80   :  { %v112_v32 = vadd.f32 %v111_v30, %v110_v28 }
  0x82   :  { %v114_v36 = vadd.f32 %v113_v35, %v112_v32 }
  0x84   :  { %v116_v40 = vadd.f32 %v115_v39, %v114_v36  ;;  %v75_v42 = vpop.permute.xlu1 %74  ;;  %v70_v43 = vpop.permute.xlu0 %69 }
  0x85   :  { %v103_v45 = vmul.f32 %v70_v43, %v31_v37  ;;  %v104_v49 = vmul.f32 %v75_v42, %v32_v41 }
  0x86   :  { %v118_v47 = vadd.f32 %v117_v44, %v116_v40 }
  0x87   :  { %v121_v52 = vsel %vm109_vm0, %v103_v45, 0.0  ;;  %v123_v57 = vsel %vm109_vm0, %v104_v49, 0.0 }
  0x88   :  { %v120_v50 = vadd.f32 %v119_v48, %v118_v47 }
  0x8a   :  { %v122_v53 = vadd.f32 %v121_v52, %v120_v50 }
  0x8c   :  { %v124_v59 = vadd.f32 %v123_v57, %v122_v53  ;;  %v90_v60 = vpop.permute.xlu1 %89  ;;  %v85_v61 = vpop.permute.xlu0 %84 }
  0x8d   :  { %v107_v63 = vmul.f32 %v90_v60, %v35_v54  ;;  %v106_v0 = vmul.f32 %v85_v61, %v34_v55 }
  0x8e   :  { %v126_v1 = vadd.f32 %v125_v62, %v124_v59 }
  0x8f   :  { %v127_v3 = vsel %vm109_vm0, %v106_v0, 0.0  ;;  %v129_v5 = vsel %vm109_vm0, %v107_v63, 0.0 }
  0x90   :  { %v128_v4 = vadd.f32 %v127_v3, %v126_v1 }
  0x92   :  { %v130_v6 = vadd.f32 %v129_v5, %v128_v4 }
  0x94   :  { %v132_v8 = vadd.f32 %v131_v7, %v130_v6  ;;  %v142_v15 = vpop.permute.xlu0 %141 }
  0x96   :  { %v133_v9 = vrot.slane %v132_v8, 4 }
  0x98   :  { %v134_v10 = vadd.f32 %v133_v9, %v132_v8 }
  0x9a   :  { %v135_v11 = vrot.slane %v134_v10, 2 }
  0x9c   :  { %v136_v12 = vadd.f32 %v135_v11, %v134_v10 }
  0x9e   :  { %v137_v13 = vrot.slane %v136_v12, 1 }
  0xa0   :  { %v138_v14 = vadd.f32 %v137_v13, %v136_v12 }
  0xa2   :  { %v144_v16 = vadd.f32 %v142_v15, %v138_v14 }
  0xa4   :  { %146 = vst.msk [vmem:[#allocation2] sm:$0x1] %vm145_vm1, %v144_v16 }
  0xa5   :  { %157 = dma.vmem_to_hbm [thread:$0]  %s153_s30, 16, %s155_s5, [#allocation3]  }
  0xa6   :  { %192 = dma.done.wait [#allocation3], 16  }
  0xa7   :  { %193 = vsyncadd [#allocation3], 4294967280 }
  0xa8   :  { %162 = vsyncpa [#allocation3], 1 }

</bundles_post_ra>
